<compile_context>
chip_gen: v5e
topology: v5e:2x2
jax: 0.10.0
libtpu: 0.0.40
codegen_flags: <defaults>
</compile_context>

<pallas_src>
import functools

import jax
import jax.numpy as jnp
from jax.experimental import pallas as pl
from jax.experimental.pallas import tpu as pltpu


# Batch-row tile for the large-batch grid path (also the threshold below which a
# single grid-less call is used).
_BATCH_TILE = 256


# ----------------------------------------------------------------------------- epilogue helpers
def _epilogue_dist(logit, dist_ref):
    # sigmoid via one exp: e = exp(-|z|); sigmoid = z>=0 ? 1/(1+e) : e/(1+e).
    # The divide goes through the (nearly free) approximate-reciprocal path.
    e = jnp.exp(-jnp.abs(logit))
    inv = pl.reciprocal(1.0 + e, approx=True)
    dist_ref[...] = jnp.where(logit >= 0.0, inv, e * inv)
    return e                      # reused by the BCE term


def _epilogue_loss(logit, e, tv_ref, bce_ref):
    # BCEWithLogitsLoss per element: max(z,0) - z*t + log1p(exp(-|z|)); the exp is
    # shared with the sigmoid above. Only row-sums here; the mean is finished in
    # the wrapper (keeps the batch grid axis fully parallel, no accumulator).
    per = jnp.maximum(logit, 0.0) - logit * tv_ref[...] + jnp.log1p(e)
    bce_ref[...] = jnp.sum(per, axis=1, keepdims=True)        # (rows, 1)


# ----------------------------------------------------------------------------- kernels
def _hier_loss_kernel(x_ref, vt_ref, priort_ref, tv_ref, dist_ref, bce_ref):
    # logit = (x @ V.T) @ prior.T  ==  x @ (prior @ V).T   (reassociated)
    h = jnp.dot(x_ref[...], vt_ref[...], preferred_element_type=jnp.float32)
    logit = jnp.dot(h, priort_ref[...], preferred_element_type=jnp.float32)
    e = _epilogue_dist(logit, dist_ref)
    _epilogue_loss(logit, e, tv_ref, bce_ref)


def _hier_dist_kernel(x_ref, vt_ref, priort_ref, dist_ref):
    h = jnp.dot(x_ref[...], vt_ref[...], preferred_element_type=jnp.float32)
    logit = jnp.dot(h, priort_ref[...], preferred_element_type=jnp.float32)
    _epilogue_dist(logit, dist_ref)


def _linear_loss_kernel(x_ref, wt_ref, b_ref, tv_ref, dist_ref, bce_ref):
    logit = (jnp.dot(x_ref[...], wt_ref[...], preferred_element_type=jnp.float32)
             + b_ref[...])
    e = _epilogue_dist(logit, dist_ref)
    _epilogue_loss(logit, e, tv_ref, bce_ref)


def _linear_dist_kernel(x_ref, wt_ref, b_ref, dist_ref):
    logit = (jnp.dot(x_ref[...], wt_ref[...], preferred_element_type=jnp.float32)
             + b_ref[...])
    _epilogue_dist(logit, dist_ref)


# ----------------------------------------------------------------------------- dispatch
def _run(kernel, x, weights, type_vec, n_types, matmul_flops):
    """One grid-less call for small problems; a batch-tiled, megacore-parallel
    grid (weights resident) for large batches."""
    B = x.shape[0]
    N = n_types
    with_loss = type_vec is not None
    inputs = (x,) + tuple(weights) + ((type_vec,) if with_loss else ())

    out_shape = [jax.ShapeDtypeStruct((B, N), jnp.float32)]               # distribution
    if with_loss:
        out_shape.append(jax.ShapeDtypeStruct((B, 1), jnp.float32))       # per-row BCE sums
    out_shape = tuple(out_shape)

    elems = B * N
    in_bytes = sum(int(a.size) * a.dtype.itemsize for a in inputs)
    out_bytes = B * N * 4 + (B * 4 if with_loss else 0)
    cost = pl.CostEstimate(
        flops=int(matmul_flops + (10 if with_loss else 5) * elems),
        transcendentals=int((3 if with_loss else 2) * elems),
        bytes_accessed=int(in_bytes + out_bytes))

    tiled = (B > _BATCH_TILE) and (B % _BATCH_TILE == 0)
    if not tiled:
        # Whole problem resident in VMEM, single invocation, zero per-step DMAs.
        vmem = functools.partial(pl.BlockSpec, memory_space=pltpu.MemorySpace.VMEM)
        outs = pl.pallas_call(
            kernel,
            out_shape=out_shape,
            in_specs=[vmem() for _ in inputs],
            out_specs=tuple(vmem() for _ in out_shape),
            cost_estimate=cost,
        )(*inputs)
    else:
        # Batch-tiled grid: weights stay resident (constant index_map); the batch
        # axis is "parallel" so multi-TC chips split rows; VMEM bounded per tile.
        tb = _BATCH_TILE
        in_specs = [pl.BlockSpec((tb, x.shape[1]), lambda i: (i, 0))]
        in_specs += [pl.BlockSpec(w.shape, lambda i: (0, 0)) for w in weights]
        if with_loss:
            in_specs.append(pl.BlockSpec((tb, N), lambda i: (i, 0)))
        out_specs = [pl.BlockSpec((tb, N), lambda i: (i, 0))]
        if with_loss:
            out_specs.append(pl.BlockSpec((tb, 1), lambda i: (i, 0)))
        outs = pl.pallas_call(
            kernel,
            grid=(B // tb,),
            out_shape=out_shape,
            in_specs=in_specs,
            out_specs=tuple(out_specs),
            compiler_params=pltpu.CompilerParams(
                dimension_semantics=("parallel",)),
            cost_estimate=cost,
        )(*inputs)

    if with_loss:
        dist, bce_rows = outs
        loss = jnp.sum(bce_rows) * (1.0 / (B * N))     # finish the mean in the wrapper
        return loss, dist
    return None, outs[0]


# ----------------------------------------------------------------------------- public wrappers
def classifier_hier_forward(x, prior, V, type_vec=None):
    """use_hierarchy == 1 path.  x: (B, D); prior: (N, N); V: (N, D)."""
    B, D = x.shape
    N = prior.shape[0]
    # Pre-transpose once on the XLA side; the kernel sees plain (M,K)x(K,N) operands.
    matmul_flops = 2 * B * D * N + 2 * B * N * N
    kernel = _hier_loss_kernel if type_vec is not None else _hier_dist_kernel
    return _run(kernel, x, (V.T, prior.T), type_vec, N, matmul_flops)


def hier_effective_weight(prior, V):
    """Hoisted hierarchy weight W_eff = prior @ V  (shape (N, D), nn.Linear layout).

    prior is static and V changes only once per optimizer step, so for inference /
    repeated forwards compute this once and call classifier_linear_forward with a
    zero bias — the hierarchy path then costs exactly as much as the linear path."""
    return prior @ V


def classifier_linear_forward(x, W_lin, b_lin, type_vec=None):
    """use_hierarchy == 0 path (nn.Linear).  x: (B, D); W_lin: (N, D); b_lin: (1, N)."""
    B, D = x.shape
    N = W_lin.shape[0]
    matmul_flops = 2 * B * D * N + B * N
    kernel = _linear_loss_kernel if type_vec is not None else _linear_dist_kernel
    return _run(kernel, x, (W_lin.T, b_lin), type_vec, N, matmul_flops)


# ----------------------------------------------------------------------------- main
if __name__ == "__main__":
    # Shapes implied by the module's args:
    #   context_rnn_size=32, context_input_size=32, use_doc=0, use_manual_feature=0
    #   -> input_size D = 64; num_types N = 128 (vocab size); batch B = 8
    B, D, N = 8, 64, 128
    PARAM_INIT, BIAS = 0.01, 1

    key = jax.random.PRNGKey(0)
    kx, kv, kw, kb, kt, kx2, kt2 = jax.random.split(key, 7)

    x = jax.random.normal(kx, (B, D), dtype=jnp.float32)
    type_vec = (jax.random.uniform(kt, (B, N)) < 0.15).astype(jnp.float32)

    # Hierarchy prior: each type marks itself and its parent (binary-tree style),
    # standing in for Classifier.create_prior()'s vocab walk (host-side glue).
    idx = jnp.arange(N)
    prior = jnp.eye(N, dtype=jnp.float32).at[idx, idx // 2].set(1.0)
    V = jax.random.uniform(kv, (N, D), jnp.float32, -PARAM_INIT, PARAM_INIT)

    # nn.Linear parameters for the use_hierarchy == 0 path.
    W_lin = jax.random.uniform(kw, (N, D), jnp.float32, -PARAM_INIT, PARAM_INIT)
    b_lin = (jax.random.uniform(kb, (1, N), jnp.float32, -PARAM_INIT, PARAM_INIT)
             if BIAS == 1 else jnp.zeros((1, N), jnp.float32))

    hier_fwd = jax.jit(classifier_hier_forward)
    lin_fwd = jax.jit(classifier_linear_forward)

    loss_h, dist_h = hier_fwd(x, prior, V, type_vec)
    loss_l, dist_l = lin_fwd(x, W_lin, b_lin, type_vec)
    _, dist_h_only = hier_fwd(x, prior, V, None)              # type_vec=None -> (None, dist)

    # Hoisted-W_eff inference path (prior @ V computed once, linear kernel reused).
    w_eff = hier_effective_weight(prior, V)                   # (N, D)
    zero_b = jnp.zeros((1, N), jnp.float32)
    loss_he, dist_he = lin_fwd(x, w_eff, zero_b, type_vec)

    # Larger batch exercises the batch-tiled / megacore-parallel grid path.
    BL = 2 * _BATCH_TILE
    x_big = jax.random.normal(kx2, (BL, D), dtype=jnp.float32)
    tv_big = (jax.random.uniform(kt2, (BL, N)) < 0.15).astype(jnp.float32)
    loss_big, dist_big = hier_fwd(x_big, prior, V, tv_big)

    jax.block_until_ready((loss_h, dist_h, loss_l, dist_l, dist_h_only,
                           loss_he, dist_he, loss_big, dist_big))

    # ------------------------------------------------------------------ pure-JAX reference
    def ref_bce(logit, tv):
        return jnp.mean(jnp.maximum(logit, 0.0) - logit * tv
                        + jnp.log1p(jnp.exp(-jnp.abs(logit))))

    w_eff_ref = (prior @ V).T                                 # (D, N)
    logit_h = x @ w_eff_ref
    ref_dist_h = jax.nn.sigmoid(logit_h)
    ref_loss_h = ref_bce(logit_h, type_vec)

    logit_l = x @ W_lin.T + b_lin
    ref_dist_l = jax.nn.sigmoid(logit_l)
    ref_loss_l = ref_bce(logit_l, type_vec)

    logit_big = x_big @ w_eff_ref
    ref_dist_big = jax.nn.sigmoid(logit_big)
    ref_loss_big = ref_bce(logit_big, tv_big)

    # Tolerances: pl.reciprocal(approx=True) in the sigmoid and the reassociated
    # matmul change rounding slightly vs the pure-JAX reference (per review).
    DIST_ATOL, LOSS_ATOL = 2e-3, 1e-4

    assert dist_h.shape == (B, N) and dist_l.shape == (B, N)
    assert jnp.allclose(dist_h, ref_dist_h, atol=DIST_ATOL), "hierarchy distribution mismatch"
    assert jnp.allclose(dist_h_only, ref_dist_h, atol=DIST_ATOL), "dist-only path mismatch"
    assert jnp.allclose(dist_he, ref_dist_h, atol=DIST_ATOL), "hoisted-W_eff distribution mismatch"
    assert jnp.allclose(dist_l, ref_dist_l, atol=DIST_ATOL), "linear distribution mismatch"
    assert jnp.allclose(dist_big, ref_dist_big, atol=DIST_ATOL), "tiled-path distribution mismatch"
    assert jnp.allclose(loss_h, ref_loss_h, atol=LOSS_ATOL), "hierarchy loss mismatch"
    assert jnp.allclose(loss_he, ref_loss_h, atol=LOSS_ATOL), "hoisted-W_eff loss mismatch"
    assert jnp.allclose(loss_l, ref_loss_l, atol=LOSS_ATOL), "linear loss mismatch"
    assert jnp.allclose(loss_big, ref_loss_big, atol=LOSS_ATOL), "tiled-path loss mismatch"

    print("KERNEL_OK")
</pallas_src>

<mosaic_0001>
module attributes {stable_mosaic.version = 11 : i64} {
  func.func @_hier_loss_kernel(%arg0: memref<8x64xf32, #tpu.memory_space<vmem>>, %arg1: memref<64x128xf32, #tpu.memory_space<vmem>>, %arg2: memref<128x128xf32, #tpu.memory_space<vmem>>, %arg3: memref<8x128xf32, #tpu.memory_space<vmem>>, %arg4: memref<8x128xf32, #tpu.memory_space<vmem>>, %arg5: memref<8x1xf32, #tpu.memory_space<vmem>>) attributes {dimension_semantics = [], scalar_prefetch = 0 : i64, scratch_operands = 0 : i64, tpu.core_type = #tpu.core_type<tc>} {
    %c0 = arith.constant 0 : index
    %c0_0 = arith.constant 0 : index
    %0 = vector.load %arg0[%c0, %c0_0] : memref<8x64xf32, #tpu.memory_space<vmem>>, vector<8x64xf32>
    %c0_1 = arith.constant 0 : index
    %c0_2 = arith.constant 0 : index
    %1 = vector.load %arg1[%c0_1, %c0_2] : memref<64x128xf32, #tpu.memory_space<vmem>>, vector<64x128xf32>
    %cst = arith.constant dense<0.000000e+00> : vector<8x128xf32>
    %2 = tpu.matmul %0, %1, %cst {dimension_numbers = #tpu.dot_dimension_numbers<[1], [0], [0], [1], [0, 0, 1, 1], [], []>} : vector<8x64xf32>, vector<64x128xf32>, vector<8x128xf32> -> vector<8x128xf32>
    %c0_3 = arith.constant 0 : index
    %c0_4 = arith.constant 0 : index
    %3 = vector.load %arg2[%c0_3, %c0_4] : memref<128x128xf32, #tpu.memory_space<vmem>>, vector<128x128xf32>
    %cst_5 = arith.constant dense<0.000000e+00> : vector<8x128xf32>
    %4 = tpu.matmul %2, %3, %cst_5 {dimension_numbers = #tpu.dot_dimension_numbers<[1], [0], [0], [1], [0, 0, 1, 1], [], []>} : vector<8x128xf32>, vector<128x128xf32>, vector<8x128xf32> -> vector<8x128xf32>
    %5 = math.absf %4 : vector<8x128xf32>
    %cst_6 = arith.constant 0.000000e+00 : f32
    %6 = vector.broadcast %cst_6 : f32 to vector<8x128xf32>
    %7 = arith.subf %6, %5 : vector<8x128xf32>
    %8 = math.exp %7 : vector<8x128xf32>
    %cst_7 = arith.constant 1.000000e+00 : f32
    %9 = vector.broadcast %cst_7 : f32 to vector<8x128xf32>
    %10 = arith.addf %9, %8 : vector<8x128xf32>
    %11 = tpu.reciprocal %10 {approx = true} : vector<8x128xf32> -> vector<8x128xf32>
    %cst_8 = arith.constant 0.000000e+00 : f32
    %12 = vector.broadcast %cst_8 : f32 to vector<8x128xf32>
    %13 = arith.cmpf oge, %4, %12 : vector<8x128xf32>
    %14 = arith.mulf %8, %11 : vector<8x128xf32>
    %15 = arith.select %13, %11, %14 : vector<8x128xi1>, vector<8x128xf32>
    %c0_9 = arith.constant 0 : index
    %c0_10 = arith.constant 0 : index
    %16 = vector.load %arg4[%c0_9, %c0_10] : memref<8x128xf32, #tpu.memory_space<vmem>>, vector<8x128xf32>
    tpu.vector_store %arg4[%c0_9, %c0_10], %15 {strides = array<i32>} : memref<8x128xf32, #tpu.memory_space<vmem>>, vector<8x128xf32>,
    %cst_11 = arith.constant 0.000000e+00 : f32
    %17 = vector.broadcast %cst_11 : f32 to vector<8x128xf32>
    %18 = arith.maximumf %4, %17 : vector<8x128xf32>
    %c0_12 = arith.constant 0 : index
    %c0_13 = arith.constant 0 : index
    %19 = vector.load %arg3[%c0_12, %c0_13] : memref<8x128xf32, #tpu.memory_space<vmem>>, vector<8x128xf32>
    %20 = arith.mulf %4, %19 : vector<8x128xf32>
    %21 = arith.subf %18, %20 : vector<8x128xf32>
    %22 = math.log1p %8 : vector<8x128xf32>
    %23 = arith.addf %21, %22 : vector<8x128xf32>
    %cst_14 = arith.constant dense<0.000000e+00> : vector<8xf32>
    %24 = vector.multi_reduction <add>, %23, %cst_14 [1] : vector<8x128xf32> to vector<8xf32>
    %25 = vector.shape_cast %24 : vector<8xf32> to vector<8x1xf32>
    %c0_15 = arith.constant 0 : index
    %c0_16 = arith.constant 0 : index
    %26 = vector.load %arg5[%c0_15, %c0_16] : memref<8x1xf32, #tpu.memory_space<vmem>>, vector<8x1xf32>
    tpu.vector_store %arg5[%c0_15, %c0_16], %25 {strides = array<i32>} : memref<8x1xf32, #tpu.memory_space<vmem>>, vector<8x1xf32>,
    return
  }
}

</mosaic_0001>

<bundles_post_ra>
// kernel: classifier_hier_forward.1
= control target key start
LH: loop header
LB: loop body
LE: loop exit
PB: predicated region body
PF: predicated region fallthrough
CT: control target
= control target key end

     0   :  { %s286_s0 = inlined_call_operand.vmem [shape: f32[8,64], index: 0, kind: input, shape index: {}]   ;;  %s287_s1 = inlined_call_operand.vmem [shape: f32[64,128], index: 1, kind: input, shape index: {}]   ;;  %s288_s2 = inlined_call_operand.vmem [shape: f32[128,128], index: 2, kind: input, shape index: {}]   ;;  %s289_s3 = inlined_call_operand.vmem [shape: f32[8,128], index: 3, kind: input, shape index: {}]   ;;  %s290_s4 = inlined_call_operand.hbm [shape: f32[8,128], index: 4, kind: output, shape index: {0}]   ;;  %s291_s5 = inlined_call_operand.vmem [shape: f32[8,1], index: 5, kind: output, shape index: {1}]  }
   0x1   :  { %v28_v0 = vld [vmem:[%s287_s1 + $0x38] sm:$0xff]  ;;  %v27_v1 = vld [vmem:[%s287_s1 + $0x30] sm:$0xff]  ;;  %v26_v2 = vld [vmem:[%s287_s1 + $0x28] sm:$0xff] }
   0x2   :  { %41 = vmatpush.msra.mxu0 %v28_v0  ;;  %v68_v3 = vld [vmem:[%s288_s2 + $0x78] sm:$0xff]  ;;  %v67_v4 = vld [vmem:[%s288_s2 + $0x70] sm:$0xff]  ;;  %v25_v5 = vld [vmem:[%s287_s1 + $0x20] sm:$0xff] }
   0x3   :  { %69 = vmatpush.msra.mxu1 %v68_v3  ;;  %v66_v6 = vld [vmem:[%s288_s2 + $0x68] sm:$0xff]  ;;  %v24_v7 = vld [vmem:[%s287_s1 + $0x18] sm:$0xff]  ;;  %v65_v8 = vld [vmem:[%s288_s2 + $0x60] sm:$0xff] }
   0x4   :  { %42 = vmatpush.msra.mxu0 %v27_v1  ;;  %v23_v9 = vld [vmem:[%s287_s1 + $0x10] sm:$0xff] }
   0x5   :  { %70 = vmatpush.msra.mxu1 %v67_v4 }
   0x6   :  { %43 = vmatpush.msra.mxu0 %v26_v2 }
   0x7   :  { %71 = vmatpush.msra.mxu1 %v66_v6 }
   0x8   :  { %44 = vmatpush.msra.mxu0 %v25_v5 }
   0x9   :  { %11 = vsyncpa [#allocation3], 0  ;;  %v64_v10 = vld [vmem:[%s288_s2 + $0x58] sm:$0xff]  ;;  %v22_v11 = vld [vmem:[%s287_s1 + $0x8] sm:$0xff]  ;;  %72 = vmatpush.msra.mxu1 %v65_v8  ;;  %vm29_vm0 = vcmask 523264   ;;  %s124_s21 = sshll.u32 %s290_s4, 4  ;;  %s125_s21 = int_to_ptr.hbm [resolvable:$true] %s124_s21 }
   0xa   :  { %45 = vmatpush.msra.mxu0 %v24_v7  ;;  %v63_v12 = vld [vmem:[%s288_s2 + $0x50] sm:$0xff]  ;;  %v21_v13 = vld [vmem:[%s287_s1] sm:$0xff]  ;;  %v62_v15 = vld [vmem:[%s288_s2 + $0x48] sm:$0xff]  ;;  %vm115_vm3 = vcmask 7168  }
   0xb   :  { %73 = vmatpush.msra.mxu1 %v64_v10  ;;  %v20_v14 = vld [vmem:[%s286_s0] sm:$0xff]  ;;  %v60_v17 = vld [vmem:[%s288_s2 + $0x38] sm:$0xff]  ;;  %v59_v18 = vld [vmem:[%s288_s2 + $0x30] sm:$0xff] }
   0xc   :  { %46 = vmatpush.msra.mxu0 %v23_v9  ;;  %v61_v16 = vld [vmem:[%s288_s2 + $0x40] sm:$0xff]  ;;  %v58_v19 = vld [vmem:[%s288_s2 + $0x28] sm:$0xff]  ;;  %v56_v21 = vld [vmem:[%s288_s2 + $0x18] sm:$0xff] }
   0xd   :  { %74 = vmatpush.msra.mxu1 %v63_v12  ;;  %v57_v20 = vld [vmem:[%s288_s2 + $0x20] sm:$0xff]  ;;  %v55_v22 = vld [vmem:[%s288_s2 + $0x10] sm:$0xff]  ;;  %v54_v23 = vld [vmem:[%s288_s2 + $0x8] sm:$0xff] }
   0xe   :  { %47 = vmatpush.msra.mxu0 %v22_v11  ;;  %v53_v24 = vld [vmem:[%s288_s2] sm:$0xff]  ;;  %s171_s2 = smov [#allocation2]  }
   0xf   :  { %75 = vmatpush.msra.mxu1 %v62_v15  ;;  %v100_v33 = vld [vmem:[%s289_s3] sm:$0xff]  ;;  %s122_s18 = sshll.u32 %s171_s2, 4  ;;  %s123_s18 = int_to_ptr.vmem [resolvable:$true] %s122_s18 }
  0x10   :  { %48 = vmatpush.msra.mxu0 %v21_v13 }
  0x11   :  { %137 = vmatmul.msk.f32.vlgmr.msra.gmra.mxu0 %vm29_vm0, %v20_v14  ;;  %76 = vmatpush.msra.mxu1 %v61_v16 }
  0x13   :  { %77 = vmatpush.msra.mxu1 %v60_v17 }
  0x15   :  { %78 = vmatpush.msra.mxu1 %v59_v18 }
  0x17   :  { %79 = vmatpush.msra.mxu1 %v58_v19 }
  0x19   :  { %80 = vmatpush.msra.mxu1 %v57_v20 }
  0x1b   :  { %81 = vmatpush.msra.mxu1 %v56_v21 }
  0x1d   :  { %82 = vmatpush.msra.mxu1 %v55_v22 }
  0x1f   :  { %83 = vmatpush.msra.mxu1 %v54_v23 }
  0x21   :  { %84 = vmatpush.msra.mxu1 %v53_v24 }
  0x8e   :  { %v50_v25 = vpop.f32.mrf.mxu0 }
  0x8f   :  { %85 = vmatmul.f32.vlgmr.msra.gmra.mxu1 %v50_v25 }
 0x10c   :  { %v86_v26 = vpop.f32.mrf.mxu1 }
 0x10d   :  { %v89_v27 = vand.u32 2147483647, %v86_v26  ;;  %v99_v35 = vmax.f32 %v86_v26, 0.0  ;;  %v101_v36 = vmul.f32 %v100_v33, %v86_v26  ;;  %vm95_vm1 = vcmp.ge.f32.partialorder %v86_v26, 0.0 }
 0x10f   :  { %v90_v28 = vsub.f32 0.0, %v89_v27  ;;  %v102_v43 = vsub.f32 %v99_v35, %v101_v36 }
 0x111   :  { %v91_v29 = vmul.f32 1.442695, %v90_v28 }
 0x113   :  { %139 = vpow2.f32 %v91_v29 }
 0x119   :  { %v140_v30 = vpop.eup %139 }
 0x11a   :  { %v93_v31 = vadd.f32 1.0, %v140_v30  ;;  %v106_v32 = vmul.f32 -0.5, %v140_v30  ;;  %v109_v37 = vand.u32 2147483647, %v140_v30 }
 0x11c   :  { %141 = vrcp.f32 %v93_v31  ;;  %v107_v34 = vadd.f32 1.0, %v106_v32  ;;  %vm110_vm2 = vcmp.lt.f32.partialorder %v109_v37, 0.0004427343 }
 0x11d   :  { %143 = vlog2.f32 %v93_v31 }
 0x11e   :  { %v108_v42 = vmul.f32 %v140_v30, %v107_v34 }
 0x122   :  { %v142_v38 = vpop.eup %141 }
 0x123   :  { %v144_v39 = vpop.eup %143  ;;  %v96_v40 = vmul.f32 %v142_v38, %v140_v30 }
 0x124   :  { %v105_v41 = vmul.f32 0.6931472, %v144_v39 }
 0x125   :  { %v97_v44 = vsel %vm95_vm1, %v142_v38, %v96_v40 }
 0x126   :  { %v111_v45 = vsel %vm110_vm2, %v108_v42, %v105_v41  ;;  %98 = vst [vmem:[#allocation2] sm:$0xff] %v97_v44 }
 0x127   :  { %v112_v46 = vadd.f32 %v111_v45, %v102_v43  ;;  %127 = dma.vmem_to_hbm [thread:$0]  %s123_s18, 128, %s125_s21, [#allocation3]  }
 0x129   :  { %113 = vadd.xlane.f32.xlu0 %v112_v46 }
 0x19c   :  { %v114_v47 = vpop.xlane.xlu0 %113 }
 0x19d   :  { %116 = vst.msk [vmem:[%s291_s5] sm:$0xff] %vm115_vm3, %v114_v47 }
 0x19e   :  { %169 = dma.done.wait [#allocation3], 128  }
 0x19f   :  { %170 = vsyncadd [#allocation3], 4294967168 }
 0x1a0   :  { %136 = vsyncpa [#allocation3], 1 }

</bundles_post_ra>
